<compile_context>
chip_gen: v7x
topology: tpu7x:2x2x1
jax: 0.10.0
libtpu: 0.0.40
codegen_flags: <defaults>
</compile_context>

<pallas_src>
import jax
import jax.numpy as jnp
from jax.experimental import pallas as pl
from jax.experimental.pallas import tpu as pltpu

# Layer widths of the PyTorch Sequential.
LAYER_DIMS = (2, 8, 16, 32, 64, 32, 16, 8, 2)
NUM_LAYERS = len(LAYER_DIMS) - 1   # 8 Linear layers
PAD = 128                          # lane-dense padded width for every layer
TILE_B_DEFAULT = 1024              # batch tile; sweep 512-2048 (keep modest on v5e)


def _round_up(n, m):
    return (n + m - 1) // m * m


def _elu(h):
    # ELU with alpha=1.0 (PyTorch default); clamp before exp for safety.
    return jnp.where(h > 0, h, jnp.exp(jnp.minimum(h, 0.0)) - 1.0)


def mlp_kernel(x_ref, w_ref, b_ref, o_ref):
    """x_ref: (TILE_B, 2) f32; w_ref: (8,128,128) bf16 (zero-padded);
    b_ref: (8,1,128) f32 (zero-padded); o_ref: (TILE_B, 128) f32 (first 2 lanes real)."""
    x = x_ref[...].astype(jnp.float32)                       # (TILE_B, 2)

    # Layer 0: K=2 -> two broadcast FMAs on the VPU instead of a wasted MXU pass.
    w0 = w_ref[0].astype(jnp.float32)                        # (128, 128)
    h = (x[:, 0:1] * w0[0:1, :]
         + x[:, 1:2] * w0[1:2, :]
         + b_ref[0])                                         # (TILE_B, 128) f32
    h = _elu(h)

    # Layers 1..7: bf16 MXU matmuls with f32 accumulation; ELU between layers.
    for layer in range(1, NUM_LAYERS):
        h = (jnp.dot(h.astype(jnp.bfloat16), w_ref[layer],
                     preferred_element_type=jnp.float32)
             + b_ref[layer])
        if layer < NUM_LAYERS - 1:
            h = _elu(h)

    o_ref[...] = h.astype(o_ref.dtype)


def mlp_forward(x, w_packed, b_packed, *, tile_b=TILE_B_DEFAULT):
    """x: (B, 2) f32; w_packed: (8,128,128) bf16; b_packed: (8,1,128) f32."""
    B, in_dim = x.shape
    out_dim = LAYER_DIMS[-1]

    tile_b = min(tile_b, _round_up(B, 8))     # multiple of 8 (sublane rule)
    b_pad = _round_up(B, tile_b)
    if b_pad != B:
        x = jnp.pad(x, ((0, b_pad - B), (0, 0)))

    out = pl.pallas_call(
        mlp_kernel,
        out_shape=jax.ShapeDtypeStruct((b_pad, PAD), jnp.float32),
        grid=(b_pad // tile_b,),
        in_specs=[
            pl.BlockSpec((tile_b, in_dim), lambda i: (i, 0)),
            # Full-extent packed params: one DMA, VMEM-resident across all batch tiles.
            pl.BlockSpec((NUM_LAYERS, PAD, PAD), lambda i: (0, 0, 0)),
            pl.BlockSpec((NUM_LAYERS, 1, PAD), lambda i: (0, 0, 0)),
        ],
        out_specs=pl.BlockSpec((tile_b, PAD), lambda i: (i, 0)),
        compiler_params=pltpu.CompilerParams(
            dimension_semantics=("parallel",)),
    )(x, w_packed, b_packed)

    # Lane-dense output slab; slice the real rows/columns in the wrapper.
    return out[:B, :out_dim]


def init_params(key):
    """Deterministic init mimicking PyTorch nn.Linear default:
    U(-1/sqrt(fan_in), 1/sqrt(fan_in)) for both weight and bias.
    Weights are stored (in_features, out_features) so the kernel computes h @ W + b."""
    params = []
    for layer in range(NUM_LAYERS):
        fan_in, fan_out = LAYER_DIMS[layer], LAYER_DIMS[layer + 1]
        key, kw, kb = jax.random.split(key, 3)
        bound = 1.0 / jnp.sqrt(jnp.float32(fan_in))
        w = jax.random.uniform(kw, (fan_in, fan_out), jnp.float32, -bound, bound)
        b = jax.random.uniform(kb, (1, fan_out), jnp.float32, -bound, bound)
        params.append((w, b))
    return params


def pack_params(params):
    """Zero-pad every layer to 128x128 / 128 and stack into two arrays."""
    w_packed = jnp.zeros((NUM_LAYERS, PAD, PAD), jnp.bfloat16)
    b_packed = jnp.zeros((NUM_LAYERS, 1, PAD), jnp.float32)
    for layer, (w, b) in enumerate(params):
        fin, fout = w.shape
        w_packed = w_packed.at[layer, :fin, :fout].set(w.astype(jnp.bfloat16))
        b_packed = b_packed.at[layer, 0, :fout].set(b.reshape(-1))
    return w_packed, b_packed


def reference_forward_f32(x, params):
    """Pure f32 reference with the original PyTorch semantics."""
    h = x
    for layer, (w, b) in enumerate(params):
        h = h @ w + b
        if layer < NUM_LAYERS - 1:
            h = _elu(h)
    return h


def reference_forward_bf16(x, params):
    """Pure-JAX reference mirroring the kernel's numerics
    (bf16 matmul operands, f32 accumulation, VPU FMA for layer 0)."""
    h = x.astype(jnp.float32)
    for layer, (w, b) in enumerate(params):
        wb = w.astype(jnp.bfloat16)
        if layer == 0:
            h = (h[:, 0:1] * wb[0:1, :].astype(jnp.float32)
                 + h[:, 1:2] * wb[1:2, :].astype(jnp.float32) + b)
        else:
            h = jnp.dot(h.astype(jnp.bfloat16), wb,
                        preferred_element_type=jnp.float32) + b
        if layer < NUM_LAYERS - 1:
            h = _elu(h)
    return h


if __name__ == "__main__":
    root = jax.random.PRNGKey(0)
    kparams, kx, kx2 = jax.random.split(root, 3)

    params = init_params(kparams)
    w_packed, b_packed = pack_params(params)

    # Small correctness check (module's nominal input shape: (batch, 2)).
    batch = 8
    x = jax.random.normal(kx, (batch, LAYER_DIMS[0]), jnp.float32)
    y = jax.block_until_ready(mlp_forward(x, w_packed, b_packed))
    assert y.shape == (batch, LAYER_DIMS[-1])

    y_bf16_ref = reference_forward_bf16(x, params)
    y_f32_ref = reference_forward_f32(x, params)
    assert jnp.allclose(y, y_bf16_ref, atol=1e-2, rtol=1e-2), \
        "mismatch vs bf16-matched reference"
    # bf16 MXU operands -> loose tolerance vs the pure-f32 reference
    assert jnp.allclose(y, y_f32_ref, atol=1e-1, rtol=1e-1), \
        "mismatch vs f32 reference"

    # Multi-tile path: exercises batch tiling + the parallel grid axis (megacore on v7x).
    x_big = jax.random.normal(kx2, (4096, LAYER_DIMS[0]), jnp.float32)
    y_big = jax.block_until_ready(
        mlp_forward(x_big, w_packed, b_packed, tile_b=1024))
    assert y_big.shape == (4096, LAYER_DIMS[-1])
    assert jnp.allclose(y_big, reference_forward_bf16(x_big, params),
                        atol=1e-2, rtol=1e-2), "mismatch (tiled path)"

    print("KERNEL_OK")
</pallas_src>

<mosaic_0001>
module attributes {stable_mosaic.version = 11 : i64} {
  func.func @mlp_kernel(%arg0: i32, %arg1: memref<8x2xf32, #tpu.memory_space<vmem>>, %arg2: memref<8x128x128xbf16, #tpu.memory_space<vmem>>, %arg3: memref<8x1x128xf32, #tpu.memory_space<vmem>>, %arg4: memref<8x128xf32, #tpu.memory_space<vmem>>) attributes {dimension_semantics = [#tpu.dimension_semantics<parallel>], iteration_bounds = array<i64: 1>, scalar_prefetch = 0 : i64, scratch_operands = 0 : i64, tpu.core_type = #tpu.core_type<tc>, window_params = [{transform_indices = @transform_0, window_bounds = array<i64: 8, 2>}, {pipeline_mode = #tpu.pipeline_mode<synchronous>, transform_indices = @transform_1, window_bounds = array<i64: 8, 128, 128>}, {pipeline_mode = #tpu.pipeline_mode<synchronous>, transform_indices = @transform_2, window_bounds = array<i64: 8, 1, 128>}, {transform_indices = @transform_3, window_bounds = array<i64: 8, 128>}]} {
    %c0 = arith.constant 0 : index
    %c0_0 = arith.constant 0 : index
    %0 = vector.load %arg1[%c0, %c0_0] : memref<8x2xf32, #tpu.memory_space<vmem>>, vector<8x2xf32>
    %c0_1 = arith.constant 0 : index
    %c0_2 = arith.constant 0 : index
    %c0_3 = arith.constant 0 : index
    %1 = vector.load %arg2[%c0_1, %c0_2, %c0_3] : memref<8x128x128xbf16, #tpu.memory_space<vmem>>, vector<1x128x128xbf16>
    %2 = vector.shape_cast %1 : vector<1x128x128xbf16> to vector<128x128xbf16>
    %3 = arith.extf %2 : vector<128x128xbf16> to vector<128x128xf32>
    %4 = vector.extract_strided_slice %0 {offsets = [0, 0], sizes = [8, 1], strides = [1, 1]} : vector<8x2xf32> to vector<8x1xf32>
    %5 = vector.extract_strided_slice %3 {offsets = [0, 0], sizes = [1, 128], strides = [1, 1]} : vector<128x128xf32> to vector<1x128xf32>
    %6 = vector.broadcast %4 : vector<8x1xf32> to vector<8x128xf32>
    %7 = vector.broadcast %5 : vector<1x128xf32> to vector<8x128xf32>
    %8 = arith.mulf %6, %7 : vector<8x128xf32>
    %9 = vector.extract_strided_slice %0 {offsets = [0, 1], sizes = [8, 1], strides = [1, 1]} : vector<8x2xf32> to vector<8x1xf32>
    %10 = vector.extract_strided_slice %3 {offsets = [1, 0], sizes = [1, 128], strides = [1, 1]} : vector<128x128xf32> to vector<1x128xf32>
    %11 = vector.broadcast %9 : vector<8x1xf32> to vector<8x128xf32>
    %12 = vector.broadcast %10 : vector<1x128xf32> to vector<8x128xf32>
    %13 = arith.mulf %11, %12 : vector<8x128xf32>
    %14 = arith.addf %8, %13 : vector<8x128xf32>
    %c0_4 = arith.constant 0 : index
    %c0_5 = arith.constant 0 : index
    %c0_6 = arith.constant 0 : index
    %15 = vector.load %arg3[%c0_4, %c0_5, %c0_6] : memref<8x1x128xf32, #tpu.memory_space<vmem>>, vector<1x1x128xf32>
    %16 = vector.shape_cast %15 : vector<1x1x128xf32> to vector<1x128xf32>
    %17 = vector.broadcast %16 : vector<1x128xf32> to vector<8x128xf32>
    %18 = arith.addf %14, %17 : vector<8x128xf32>
    %cst = arith.constant 0.000000e+00 : f32
    %19 = vector.broadcast %cst : f32 to vector<8x128xf32>
    %20 = arith.cmpf ogt, %18, %19 : vector<8x128xf32>
    %cst_7 = arith.constant 0.000000e+00 : f32
    %21 = vector.broadcast %cst_7 : f32 to vector<8x128xf32>
    %22 = arith.minimumf %18, %21 : vector<8x128xf32>
    %23 = math.exp %22 : vector<8x128xf32>
    %cst_8 = arith.constant 1.000000e+00 : f32
    %24 = vector.broadcast %cst_8 : f32 to vector<8x128xf32>
    %25 = arith.subf %23, %24 : vector<8x128xf32>
    %26 = arith.select %20, %18, %25 : vector<8x128xi1>, vector<8x128xf32>
    %27 = arith.truncf %26 : vector<8x128xf32> to vector<8x128xbf16>
    %c1 = arith.constant 1 : index
    %c0_9 = arith.constant 0 : index
    %c0_10 = arith.constant 0 : index
    %28 = vector.load %arg2[%c1, %c0_9, %c0_10] : memref<8x128x128xbf16, #tpu.memory_space<vmem>>, vector<1x128x128xbf16>
    %29 = vector.shape_cast %28 : vector<1x128x128xbf16> to vector<128x128xbf16>
    %cst_11 = arith.constant dense<0.000000e+00> : vector<8x128xf32>
    %30 = tpu.matmul %27, %29, %cst_11 {dimension_numbers = #tpu.dot_dimension_numbers<[1], [0], [0], [1], [0, 0, 1, 1], [], []>} : vector<8x128xbf16>, vector<128x128xbf16>, vector<8x128xf32> -> vector<8x128xf32>
    %c1_12 = arith.constant 1 : index
    %c0_13 = arith.constant 0 : index
    %c0_14 = arith.constant 0 : index
    %31 = vector.load %arg3[%c1_12, %c0_13, %c0_14] : memref<8x1x128xf32, #tpu.memory_space<vmem>>, vector<1x1x128xf32>
    %32 = vector.shape_cast %31 : vector<1x1x128xf32> to vector<1x128xf32>
    %33 = vector.broadcast %32 : vector<1x128xf32> to vector<8x128xf32>
    %34 = arith.addf %30, %33 : vector<8x128xf32>
    %cst_15 = arith.constant 0.000000e+00 : f32
    %35 = vector.broadcast %cst_15 : f32 to vector<8x128xf32>
    %36 = arith.cmpf ogt, %34, %35 : vector<8x128xf32>
    %cst_16 = arith.constant 0.000000e+00 : f32
    %37 = vector.broadcast %cst_16 : f32 to vector<8x128xf32>
    %38 = arith.minimumf %34, %37 : vector<8x128xf32>
    %39 = math.exp %38 : vector<8x128xf32>
    %cst_17 = arith.constant 1.000000e+00 : f32
    %40 = vector.broadcast %cst_17 : f32 to vector<8x128xf32>
    %41 = arith.subf %39, %40 : vector<8x128xf32>
    %42 = arith.select %36, %34, %41 : vector<8x128xi1>, vector<8x128xf32>
    %43 = arith.truncf %42 : vector<8x128xf32> to vector<8x128xbf16>
    %c2 = arith.constant 2 : index
    %c0_18 = arith.constant 0 : index
    %c0_19 = arith.constant 0 : index
    %44 = vector.load %arg2[%c2, %c0_18, %c0_19] : memref<8x128x128xbf16, #tpu.memory_space<vmem>>, vector<1x128x128xbf16>
    %45 = vector.shape_cast %44 : vector<1x128x128xbf16> to vector<128x128xbf16>
    %cst_20 = arith.constant dense<0.000000e+00> : vector<8x128xf32>
    %46 = tpu.matmul %43, %45, %cst_20 {dimension_numbers = #tpu.dot_dimension_numbers<[1], [0], [0], [1], [0, 0, 1, 1], [], []>} : vector<8x128xbf16>, vector<128x128xbf16>, vector<8x128xf32> -> vector<8x128xf32>
    %c2_21 = arith.constant 2 : index
    %c0_22 = arith.constant 0 : index
    %c0_23 = arith.constant 0 : index
    %47 = vector.load %arg3[%c2_21, %c0_22, %c0_23] : memref<8x1x128xf32, #tpu.memory_space<vmem>>, vector<1x1x128xf32>
    %48 = vector.shape_cast %47 : vector<1x1x128xf32> to vector<1x128xf32>
    %49 = vector.broadcast %48 : vector<1x128xf32> to vector<8x128xf32>
    %50 = arith.addf %46, %49 : vector<8x128xf32>
    %cst_24 = arith.constant 0.000000e+00 : f32
    %51 = vector.broadcast %cst_24 : f32 to vector<8x128xf32>
    %52 = arith.cmpf ogt, %50, %51 : vector<8x128xf32>
    %cst_25 = arith.constant 0.000000e+00 : f32
    %53 = vector.broadcast %cst_25 : f32 to vector<8x128xf32>
    %54 = arith.minimumf %50, %53 : vector<8x128xf32>
    %55 = math.exp %54 : vector<8x128xf32>
    %cst_26 = arith.constant 1.000000e+00 : f32
    %56 = vector.broadcast %cst_26 : f32 to vector<8x128xf32>
    %57 = arith.subf %55, %56 : vector<8x128xf32>
    %58 = arith.select %52, %50, %57 : vector<8x128xi1>, vector<8x128xf32>
    %59 = arith.truncf %58 : vector<8x128xf32> to vector<8x128xbf16>
    %c3 = arith.constant 3 : index
    %c0_27 = arith.constant 0 : index
    %c0_28 = arith.constant 0 : index
    %60 = vector.load %arg2[%c3, %c0_27, %c0_28] : memref<8x128x128xbf16, #tpu.memory_space<vmem>>, vector<1x128x128xbf16>
    %61 = vector.shape_cast %60 : vector<1x128x128xbf16> to vector<128x128xbf16>
    %cst_29 = arith.constant dense<0.000000e+00> : vector<8x128xf32>
    %62 = tpu.matmul %59, %61, %cst_29 {dimension_numbers = #tpu.dot_dimension_numbers<[1], [0], [0], [1], [0, 0, 1, 1], [], []>} : vector<8x128xbf16>, vector<128x128xbf16>, vector<8x128xf32> -> vector<8x128xf32>
    %c3_30 = arith.constant 3 : index
    %c0_31 = arith.constant 0 : index
    %c0_32 = arith.constant 0 : index
    %63 = vector.load %arg3[%c3_30, %c0_31, %c0_32] : memref<8x1x128xf32, #tpu.memory_space<vmem>>, vector<1x1x128xf32>
    %64 = vector.shape_cast %63 : vector<1x1x128xf32> to vector<1x128xf32>
    %65 = vector.broadcast %64 : vector<1x128xf32> to vector<8x128xf32>
    %66 = arith.addf %62, %65 : vector<8x128xf32>
    %cst_33 = arith.constant 0.000000e+00 : f32
    %67 = vector.broadcast %cst_33 : f32 to vector<8x128xf32>
    %68 = arith.cmpf ogt, %66, %67 : vector<8x128xf32>
    %cst_34 = arith.constant 0.000000e+00 : f32
    %69 = vector.broadcast %cst_34 : f32 to vector<8x128xf32>
    %70 = arith.minimumf %66, %69 : vector<8x128xf32>
    %71 = math.exp %70 : vector<8x128xf32>
    %cst_35 = arith.constant 1.000000e+00 : f32
    %72 = vector.broadcast %cst_35 : f32 to vector<8x128xf32>
    %73 = arith.subf %71, %72 : vector<8x128xf32>
    %74 = arith.select %68, %66, %73 : vector<8x128xi1>, vector<8x128xf32>
    %75 = arith.truncf %74 : vector<8x128xf32> to vector<8x128xbf16>
    %c4 = arith.constant 4 : index
    %c0_36 = arith.constant 0 : index
    %c0_37 = arith.constant 0 : index
    %76 = vector.load %arg2[%c4, %c0_36, %c0_37] : memref<8x128x128xbf16, #tpu.memory_space<vmem>>, vector<1x128x128xbf16>
    %77 = vector.shape_cast %76 : vector<1x128x128xbf16> to vector<128x128xbf16>
    %cst_38 = arith.constant dense<0.000000e+00> : vector<8x128xf32>
    %78 = tpu.matmul %75, %77, %cst_38 {dimension_numbers = #tpu.dot_dimension_numbers<[1], [0], [0], [1], [0, 0, 1, 1], [], []>} : vector<8x128xbf16>, vector<128x128xbf16>, vector<8x128xf32> -> vector<8x128xf32>
    %c4_39 = arith.constant 4 : index
    %c0_40 = arith.constant 0 : index
    %c0_41 = arith.constant 0 : index
    %79 = vector.load %arg3[%c4_39, %c0_40, %c0_41] : memref<8x1x128xf32, #tpu.memory_space<vmem>>, vector<1x1x128xf32>
    %80 = vector.shape_cast %79 : vector<1x1x128xf32> to vector<1x128xf32>
    %81 = vector.broadcast %80 : vector<1x128xf32> to vector<8x128xf32>
    %82 = arith.addf %78, %81 : vector<8x128xf32>
    %cst_42 = arith.constant 0.000000e+00 : f32
    %83 = vector.broadcast %cst_42 : f32 to vector<8x128xf32>
    %84 = arith.cmpf ogt, %82, %83 : vector<8x128xf32>
    %cst_43 = arith.constant 0.000000e+00 : f32
    %85 = vector.broadcast %cst_43 : f32 to vector<8x128xf32>
    %86 = arith.minimumf %82, %85 : vector<8x128xf32>
    %87 = math.exp %86 : vector<8x128xf32>
    %cst_44 = arith.constant 1.000000e+00 : f32
    %88 = vector.broadcast %cst_44 : f32 to vector<8x128xf32>
    %89 = arith.subf %87, %88 : vector<8x128xf32>
    %90 = arith.select %84, %82, %89 : vector<8x128xi1>, vector<8x128xf32>
    %91 = arith.truncf %90 : vector<8x128xf32> to vector<8x128xbf16>
    %c5 = arith.constant 5 : index
    %c0_45 = arith.constant 0 : index
    %c0_46 = arith.constant 0 : index
    %92 = vector.load %arg2[%c5, %c0_45, %c0_46] : memref<8x128x128xbf16, #tpu.memory_space<vmem>>, vector<1x128x128xbf16>
    %93 = vector.shape_cast %92 : vector<1x128x128xbf16> to vector<128x128xbf16>
    %cst_47 = arith.constant dense<0.000000e+00> : vector<8x128xf32>
    %94 = tpu.matmul %91, %93, %cst_47 {dimension_numbers = #tpu.dot_dimension_numbers<[1], [0], [0], [1], [0, 0, 1, 1], [], []>} : vector<8x128xbf16>, vector<128x128xbf16>, vector<8x128xf32> -> vector<8x128xf32>
    %c5_48 = arith.constant 5 : index
    %c0_49 = arith.constant 0 : index
    %c0_50 = arith.constant 0 : index
    %95 = vector.load %arg3[%c5_48, %c0_49, %c0_50] : memref<8x1x128xf32, #tpu.memory_space<vmem>>, vector<1x1x128xf32>
    %96 = vector.shape_cast %95 : vector<1x1x128xf32> to vector<1x128xf32>
    %97 = vector.broadcast %96 : vector<1x128xf32> to vector<8x128xf32>
    %98 = arith.addf %94, %97 : vector<8x128xf32>
    %cst_51 = arith.constant 0.000000e+00 : f32
    %99 = vector.broadcast %cst_51 : f32 to vector<8x128xf32>
    %100 = arith.cmpf ogt, %98, %99 : vector<8x128xf32>
    %cst_52 = arith.constant 0.000000e+00 : f32
    %101 = vector.broadcast %cst_52 : f32 to vector<8x128xf32>
    %102 = arith.minimumf %98, %101 : vector<8x128xf32>
    %103 = math.exp %102 : vector<8x128xf32>
    %cst_53 = arith.constant 1.000000e+00 : f32
    %104 = vector.broadcast %cst_53 : f32 to vector<8x128xf32>
    %105 = arith.subf %103, %104 : vector<8x128xf32>
    %106 = arith.select %100, %98, %105 : vector<8x128xi1>, vector<8x128xf32>
    %107 = arith.truncf %106 : vector<8x128xf32> to vector<8x128xbf16>
    %c6 = arith.constant 6 : index
    %c0_54 = arith.constant 0 : index
    %c0_55 = arith.constant 0 : index
    %108 = vector.load %arg2[%c6, %c0_54, %c0_55] : memref<8x128x128xbf16, #tpu.memory_space<vmem>>, vector<1x128x128xbf16>
    %109 = vector.shape_cast %108 : vector<1x128x128xbf16> to vector<128x128xbf16>
    %cst_56 = arith.constant dense<0.000000e+00> : vector<8x128xf32>
    %110 = tpu.matmul %107, %109, %cst_56 {dimension_numbers = #tpu.dot_dimension_numbers<[1], [0], [0], [1], [0, 0, 1, 1], [], []>} : vector<8x128xbf16>, vector<128x128xbf16>, vector<8x128xf32> -> vector<8x128xf32>
    %c6_57 = arith.constant 6 : index
    %c0_58 = arith.constant 0 : index
    %c0_59 = arith.constant 0 : index
    %111 = vector.load %arg3[%c6_57, %c0_58, %c0_59] : memref<8x1x128xf32, #tpu.memory_space<vmem>>, vector<1x1x128xf32>
    %112 = vector.shape_cast %111 : vector<1x1x128xf32> to vector<1x128xf32>
    %113 = vector.broadcast %112 : vector<1x128xf32> to vector<8x128xf32>
    %114 = arith.addf %110, %113 : vector<8x128xf32>
    %cst_60 = arith.constant 0.000000e+00 : f32
    %115 = vector.broadcast %cst_60 : f32 to vector<8x128xf32>
    %116 = arith.cmpf ogt, %114, %115 : vector<8x128xf32>
    %cst_61 = arith.constant 0.000000e+00 : f32
    %117 = vector.broadcast %cst_61 : f32 to vector<8x128xf32>
    %118 = arith.minimumf %114, %117 : vector<8x128xf32>
    %119 = math.exp %118 : vector<8x128xf32>
    %cst_62 = arith.constant 1.000000e+00 : f32
    %120 = vector.broadcast %cst_62 : f32 to vector<8x128xf32>
    %121 = arith.subf %119, %120 : vector<8x128xf32>
    %122 = arith.select %116, %114, %121 : vector<8x128xi1>, vector<8x128xf32>
    %123 = arith.truncf %122 : vector<8x128xf32> to vector<8x128xbf16>
    %c7 = arith.constant 7 : index
    %c0_63 = arith.constant 0 : index
    %c0_64 = arith.constant 0 : index
    %124 = vector.load %arg2[%c7, %c0_63, %c0_64] : memref<8x128x128xbf16, #tpu.memory_space<vmem>>, vector<1x128x128xbf16>
    %125 = vector.shape_cast %124 : vector<1x128x128xbf16> to vector<128x128xbf16>
    %cst_65 = arith.constant dense<0.000000e+00> : vector<8x128xf32>
    %126 = tpu.matmul %123, %125, %cst_65 {dimension_numbers = #tpu.dot_dimension_numbers<[1], [0], [0], [1], [0, 0, 1, 1], [], []>} : vector<8x128xbf16>, vector<128x128xbf16>, vector<8x128xf32> -> vector<8x128xf32>
    %c7_66 = arith.constant 7 : index
    %c0_67 = arith.constant 0 : index
    %c0_68 = arith.constant 0 : index
    %127 = vector.load %arg3[%c7_66, %c0_67, %c0_68] : memref<8x1x128xf32, #tpu.memory_space<vmem>>, vector<1x1x128xf32>
    %128 = vector.shape_cast %127 : vector<1x1x128xf32> to vector<1x128xf32>
    %129 = vector.broadcast %128 : vector<1x128xf32> to vector<8x128xf32>
    %130 = arith.addf %126, %129 : vector<8x128xf32>
    %c0_69 = arith.constant 0 : index
    %c0_70 = arith.constant 0 : index
    %131 = vector.load %arg4[%c0_69, %c0_70] : memref<8x128xf32, #tpu.memory_space<vmem>>, vector<8x128xf32>
    tpu.vector_store %arg4[%c0_69, %c0_70], %130 {strides = array<i32>} : memref<8x128xf32, #tpu.memory_space<vmem>>, vector<8x128xf32>,
    return
  }
  func.func @transform_0(%arg0: i32) -> (i32, i32) {
    %c0_i32 = arith.constant 0 : i32
    %c0_i32_0 = arith.constant 0 : i32
    return %arg0, %c0_i32 : i32, i32
  }
  func.func @transform_1(%arg0: i32) -> (i32, i32, i32) {
    %c0_i32 = arith.constant 0 : i32
    %c0_i32_0 = arith.constant 0 : i32
    %c0_i32_1 = arith.constant 0 : i32
    %c0_i32_2 = arith.constant 0 : i32
    return %c0_i32, %c0_i32_0, %c0_i32_1 : i32, i32, i32
  }
  func.func @transform_2(%arg0: i32) -> (i32, i32, i32) {
    %c0_i32 = arith.constant 0 : i32
    %c0_i32_0 = arith.constant 0 : i32
    %c0_i32_1 = arith.constant 0 : i32
    %c0_i32_2 = arith.constant 0 : i32
    return %c0_i32, %c0_i32_0, %c0_i32_1 : i32, i32, i32
  }
  func.func @transform_3(%arg0: i32) -> (i32, i32) {
    %c0_i32 = arith.constant 0 : i32
    %c0_i32_0 = arith.constant 0 : i32
    return %arg0, %c0_i32 : i32, i32
  }
}

</mosaic_0001>

<bundles_post_ra>
// kernel: tpu_custom_call.1
= control target key start
LH: loop header
LB: loop body
LE: loop exit
PB: predicated region body
PF: predicated region fallthrough
CT: control target
= control target key end

     0   :  { %8 = vsyncpa [#allocation3], 0  ;;  %s1475_s0 = inlined_call_operand.vmem [shape: f32[8,2], index: 0, kind: input, shape index: {}]   ;;  %s1476_s1 = inlined_call_operand.hbm [shape: bf16[8,128,128], index: 1, kind: input, shape index: {}]   ;;  %s1477_s2 = inlined_call_operand.vmem [shape: f32[8,1,128], index: 2, kind: input, shape index: {}]   ;;  %s1478_s3 = inlined_call_operand.hbm [shape: f32[8,128], index: 3, kind: output, shape index: {}]  }
   0x1   :  { %9 = vsyncpa [#allocation4], 0  ;;  %s1326_s12 = smov [#allocation2]   ;;  %s1278_s16 = scalar_lea.hbm %s1476_s1, 8192 }
   0x2   :  { %s17_s13 = sshll.u32 %s1326_s12, 4  ;;  %p1279_p0 = scmp.ne.s32.totalorder %s1476_s1, %s1278_s16  ;;  %s18_s13 = int_to_ptr.vmem [resolvable:$true] %s17_s13 }
   0x3   :  { %p1282_p1 = scmp.lt.u32.totalorder %s1278_s16, %s1476_s1 }
   0x5   :  { %p1284_p2 = pnand %p1282_p1, %p1279_p0 }
   0x7   :  { %1287 = shalt.err (!%p1284_p2)
}
   0x8   :  { %s1288_s21 = scalar_lea.vmem %s18_s13, 8192  ;;  %p1293_p4 = scmp.lt.s32.totalorder %s18_s13, %s18_s13 }
   0x9   :  { %p1289_p3 = scmp.ne.s32.totalorder %s18_s13, %s1288_s21  ;;  %p1294_p5 = scmp.lt.s32.totalorder %s1288_s21, %s1288_s21 }
   0xb   :  { %p1295_p6 = por %p1294_p5, %p1293_p4 }
   0xd   :  { %p1296_p7 = pnand %p1295_p6, %p1289_p3 }
   0xf   :  { %1299 = shalt.err (!%p1296_p7)
}
  0x10   :  { %s1327_s22 = smov 64   ;;  %s1328_s23 = smov 4  }
  0x11   :  { %23 = dma.hbm_to_vmem [thread:$0]  %s1476_s1, 8192, %s18_s13, [#allocation3], %s1327_s22, %s1327_s22, %s1328_s23  }
  0x12   :  { %1322 = dma.done.wait [#allocation3], 8192  }
  0x13   :  { %1323 = vsyncadd [#allocation3], 4294959104  ;;  %v1329_v0 = vmov 0   ;;  %v1330_v1 = vmov 0.0   ;;  %v30_v2 = vld [vmem:[%s1475_s0] sm:$0xff]  ;;  %v1208_v3 = vld [vmem:[#allocation2 + $0x40] sm:$0xff]   ;;  %v38_v14 = vlaneseq }
  0x14   :  { %1206 = vset.pattern.permute.xlu0 %v1329_v0  ;;  %1058 = vmatprep.subr.bf16.mxu0 %v1330_v1  ;;  %v1209_v4 = vld [vmem:[#allocation2 + $0x48] sm:$0xff]   ;;  %v1331_v5 = vmov 1   ;;  %v1210_v6 = vld [vmem:[#allocation2 + $0x50] sm:$0xff]   ;;  %v1211_v7 = vld [vmem:[#allocation2 + $0x58] sm:$0xff]   ;;  %vm1332_vm0 = vmmov 0   ;;  %s1333_s15 = smov [#allocation5]  }
  0x15   :  { %1078 = vmatprep.subr.bf16.mxu1 %v1330_v1  ;;  %35 = vperm.xlu0 %1206, %v30_v2   ;;  %v1212_v8 = vld [vmem:[#allocation2 + $0x60] sm:$0xff]   ;;  %v1213_v9 = vld [vmem:[#allocation2 + $0x68] sm:$0xff]   ;;  %v1214_v10 = vld [vmem:[#allocation2 + $0x70] sm:$0xff]   ;;  %v39_v15 = vshrl.u32 %v38_v14, 7  ;;  %s908_s16 = sshll.u32 %s1333_s15, 4  ;;  %s909_s16 = int_to_ptr.vmem [resolvable:$true] %s908_s16 }
  0x16   :  { %1059 = vmatpush3.bf16.msra.mxu0 %v1208_v3  ;;  %1074 = vmatprep.mubr.msk.bf16.mxu0 %vm1332_vm0, %v1330_v1  ;;  %v1215_v11 = vld [vmem:[#allocation2 + $0x78] sm:$0xff]   ;;  %v1216_v12 = vld [vmem:[#allocation2 + $0x80] sm:$0xff]   ;;  %v1217_v13 = vld [vmem:[#allocation2 + $0x88] sm:$0xff]   ;;  %s1300_s17 = scalar_lea.vmem %s909_s16, 128  ;;  %p1305_p9 = scmp.lt.s32.totalorder %s909_s16, %s909_s16 }
  0x17   :  { %1060 = vmatprep.subr.bf16.mxu0 %v1330_v1  ;;  %1094 = vmatprep.mubr.msk.bf16.mxu1 %vm1332_vm0, %v1330_v1  ;;  %v31_v16 = vld [vmem:[#allocation2] sm:$0xf]  ;;  %v40_v18 = vsub.s32 0, %v39_v15  ;;  %v49_v19 = vsub.s32 1, %v39_v15  ;;  %v917_v26 = vld [vmem:[%s1477_s2] ss:$0 sm:$0xff]  ;;  %p1301_p8 = scmp.ne.s32.totalorder %s909_s16, %s1300_s17  ;;  %p1306_p10 = scmp.lt.s32.totalorder %s1300_s17, %s1300_s17 }
  0x18   :  { %1079 = vmatpush3.bf16.msra.mxu1 %v1216_v12  ;;  %v32_v17 = vunpack.c.l.bf16 %v31_v16  ;;  %v1218_v35 = vld [vmem:[#allocation2 + $0x90] sm:$0xff]   ;;  %v1219_v36 = vld [vmem:[#allocation2 + $0x98] sm:$0xff]   ;;  %v1220_v37 = vld [vmem:[#allocation2 + $0xa0] sm:$0xff]  }
  0x19   :  { %1207 = vset.pattern.permute.xlu0 %v1331_v5  ;;  %1080 = vmatprep.subr.bf16.mxu1 %v1330_v1  ;;  %v1221_v38 = vld [vmem:[#allocation2 + $0xa8] sm:$0xff]   ;;  %v1222_v39 = vld [vmem:[#allocation2 + $0xb0] sm:$0xff]   ;;  %v1223_v40 = vld [vmem:[#allocation2 + $0xb8] sm:$0xff]   ;;  %p1307_p11 = por %p1306_p10, %p1305_p9 }
  0x1a   :  { %44 = vperm.xlu0 %1207, %v30_v2   ;;  %1061 = vmatpush3.bf16.msra.mxu0 %v1209_v4  ;;  %v41_v21 = vrot.slane %v32_v17, %v40_v18  ;;  %v50_v22 = vrot.slane %v32_v17, %v49_v19  ;;  %v1224_v41 = vld [vmem:[#allocation2 + $0xc0] sm:$0xff]   ;;  %v1225_v42 = vld [vmem:[#allocation2 + $0xc8] sm:$0xff]   ;;  %v920_v43 = vld [vmem:[%s1477_s2 + $0x1] ss:$0 sm:$0xff] }
  0x1b   :  { %1062 = vmatprep.subr.bf16.mxu0 %v1330_v1  ;;  %v1226_v55 = vld [vmem:[#allocation2 + $0xd0] sm:$0xff]   ;;  %v1227_v56 = vld [vmem:[#allocation2 + $0xd8] sm:$0xff]   ;;  %v1228_v57 = vld [vmem:[#allocation2 + $0xe0] sm:$0xff]   ;;  %p1308_p12 = pnand %p1307_p11, %p1301_p8 }
  0x1c   :  { %1081 = vmatpush3.bf16.msra.mxu1 %v1217_v13  ;;  %v1229_v58 = vld [vmem:[#allocation2 + $0xe8] sm:$0xff]   ;;  %v1230_v59 = vld [vmem:[#allocation2 + $0xf0] sm:$0xff]   ;;  %v1231_v60 = vld [vmem:[#allocation2 + $0xf8] sm:$0xff]  }
  0x1d   :  { %1082 = vmatprep.subr.bf16.mxu1 %v1330_v1  ;;  %v1232_v61 = vld [vmem:[#allocation2 + $0x100] sm:$0xff]   ;;  %v1233_v62 = vld [vmem:[#allocation2 + $0x108] sm:$0xff]   ;;  %v931_v63 = vld [vmem:[%s1477_s2 + $0x2] ss:$0 sm:$0xff] }
  0x1e   :  { %1063 = vmatpush3.bf16.msra.mxu0 %v1210_v6  ;;  %v1234_v12 = vld [vmem:[#allocation2 + $0x110] sm:$0xff]   ;;  %v1235_v13 = vld [vmem:[#allocation2 + $0x118] sm:$0xff]   ;;  %v1236_v14 = vld [vmem:[#allocation2 + $0x120] sm:$0xff]  }
  0x1f   :  { %1064 = vmatprep.subr.bf16.mxu0 %v1330_v1  ;;  %v1237_v15 = vld [vmem:[#allocation2 + $0x128] sm:$0xff]   ;;  %v1238_v16 = vld [vmem:[#allocation2 + $0x130] sm:$0xff]   ;;  %v1239_v17 = vld [vmem:[#allocation2 + $0x138] sm:$0xff]  }
  0x20   :  { %1083 = vmatpush3.bf16.msra.mxu1 %v1218_v35  ;;  %v1240_v18 = vld [vmem:[#allocation2 + $0x140] sm:$0xff]   ;;  %v1241_v19 = vld [vmem:[#allocation2 + $0x148] sm:$0xff]  }
  0x21   :  { %1084 = vmatprep.subr.bf16.mxu1 %v1330_v1  ;;  %v1245_v35 = vld [vmem:[#allocation2 + $0x168] sm:$0xff]  }
  0x22   :  { %1065 = vmatpush3.bf16.msra.mxu0 %v1211_v7 }
  0x23   :  { %1066 = vmatprep.subr.bf16.mxu0 %v1330_v1 }
  0x24   :  { %1085 = vmatpush3.bf16.msra.mxu1 %v1219_v36  ;;  %v1246_v36 = vld [vmem:[#allocation2 + $0x170] sm:$0xff]  }
  0x25   :  { %1086 = vmatprep.subr.bf16.mxu1 %v1330_v1 }
  0x26   :  { %1067 = vmatpush3.bf16.msra.mxu0 %v1212_v8 }
  0x27   :  { %1068 = vmatprep.subr.bf16.mxu0 %v1330_v1 }
  0x28   :  { %1087 = vmatpush3.bf16.msra.mxu1 %v1220_v37  ;;  %v1247_v37 = vld [vmem:[#allocation2 + $0x178] sm:$0xff]  }
  0x29   :  { %1088 = vmatprep.subr.bf16.mxu1 %v1330_v1 }
  0x2a   :  { %1069 = vmatpush3.bf16.msra.mxu0 %v1213_v9 }
  0x2b   :  { %1070 = vmatprep.subr.bf16.mxu0 %v1330_v1 }
  0x2c   :  { %1089 = vmatpush3.bf16.msra.mxu1 %v1221_v38  ;;  %v1248_v38 = vld [vmem:[#allocation2 + $0x180] sm:$0xff]  }
  0x2d   :  { %1090 = vmatprep.subr.bf16.mxu1 %v1330_v1 }
  0x2e   :  { %1071 = vmatpush3.bf16.msra.mxu0 %v1214_v10 }
  0x2f   :  { %1072 = vmatprep.subr.bf16.mxu0 %v1330_v1 }
  0x30   :  { %1091 = vmatpush3.bf16.msra.mxu1 %v1222_v39  ;;  %v1249_v39 = vld [vmem:[#allocation2 + $0x188] sm:$0xff]  }
  0x31   :  { %1092 = vmatprep.subr.bf16.mxu1 %v1330_v1 }
  0x32   :  { %1073 = vmatpush3.bf16.msra.mxu0 %v1215_v11 }
  0x33   :  { %1098 = vmatprep.subr.bf16.mxu0 %v1330_v1 }
  0x34   :  { %1093 = vmatpush3.bf16.msra.mxu1 %v1223_v40  ;;  %v953_v40 = vld [vmem:[%s1477_s2 + $0x4] ss:$0 sm:$0xff] }
  0x35   :  { %1118 = vmatprep.subr.bf16.mxu1 %v1330_v1 }
  0x94   :  { %v36_v20 = vpop.permute.xlu0 %35 }
  0x95   :  { %v42_v24 = vmul.f32 %v41_v21, %v36_v20  ;;  %v942_v20 = vld [vmem:[%s1477_s2 + $0x3] ss:$0 sm:$0xff] }
  0x99   :  { %v45_v23 = vpop.permute.xlu0 %44 }
  0x9a   :  { %v51_v25 = vmul.f32 %v50_v22, %v45_v23 }
  0x9c   :  { %v52_v27 = vadd.f32 %v51_v25, %v42_v24 }
  0x9e   :  { %v60_v28 = vadd.f32 %v917_v26, %v52_v27 }
  0xa0   :  { %v62_v29 = vmin.f32 %v60_v28, 0.0  ;;  %vm61_vm1 = vcmp.gt.f32.partialorder %v60_v28, 0.0 }
  0xa2   :  { %v63_v30 = vmul.f32 1.442695, %v62_v29 }
  0xa4   :  { %1264 = vpow2.f32 %v63_v30 }
  0xae   :  { %v1265_v31 = vpop.eup %1264 }
  0xaf   :  { %v918_v32 = vadd.f32 -1.0, %v1265_v31 }
  0xb1   :  { %v66_v33 = vsel %vm61_vm1, %v60_v28, %v918_v32  ;;  %v1242_v32 = vld [vmem:[#allocation2 + $0x150] sm:$0xff]  }
  0xb2   :  { %v67_v34 = vpack.c.bf16 %v66_v33, %v66_v33  ;;  %v1243_v33 = vld [vmem:[#allocation2 + $0x158] sm:$0xff]  }
  0xb4   :  { %1075 = vmatmul.mubr.bf16.vlgmr.msra.gmra.mrb[0].mxu0 %v67_v34  ;;  %v1244_v34 = vld [vmem:[#allocation2 + $0x160] sm:$0xff]  }
  0xb5   :  { %1114 = vmatprep.mubr.msk.bf16.mxu0 %vm1332_vm0, %v1330_v1  ;;  %1099 = vmatpush3.bf16.msra.mxu0 %v1224_v41 }
  0xb6   :  { %1100 = vmatprep.subr.bf16.mxu0 %v1330_v1 }
  0xb9   :  { %1101 = vmatpush3.bf16.msra.mxu0 %v1225_v42 }
  0xba   :  { %1102 = vmatprep.subr.bf16.mxu0 %v1330_v1 }
  0xbd   :  { %1103 = vmatpush3.bf16.msra.mxu0 %v1226_v55  ;;  %v1253_v55 = vld [vmem:[#allocation2 + $0x1a8] sm:$0xff]  }
  0xbe   :  { %1104 = vmatprep.subr.bf16.mxu0 %v1330_v1 }
  0xc1   :  { %1105 = vmatpush3.bf16.msra.mxu0 %v1227_v56  ;;  %v1254_v56 = vld [vmem:[#allocation2 + $0x1b0] sm:$0xff]  }
  0xc2   :  { %1106 = vmatprep.subr.bf16.mxu0 %v1330_v1 }
  0xc5   :  { %1107 = vmatpush3.bf16.msra.mxu0 %v1228_v57  ;;  %v1255_v57 = vld [vmem:[#allocation2 + $0x1b8] sm:$0xff]  }
  0xc6   :  { %1108 = vmatprep.subr.bf16.mxu0 %v1330_v1 }
  0xc9   :  { %1109 = vmatpush3.bf16.msra.mxu0 %v1229_v58  ;;  %v1256_v58 = vld [vmem:[#allocation2 + $0x1c0] sm:$0xff]  }
  0xca   :  { %1110 = vmatprep.subr.bf16.mxu0 %v1330_v1 }
  0xcd   :  { %1111 = vmatpush3.bf16.msra.mxu0 %v1230_v59  ;;  %v1257_v59 = vld [vmem:[#allocation2 + $0x1c8] sm:$0xff]  }
  0xce   :  { %1112 = vmatprep.subr.bf16.mxu0 %v1330_v1 }
  0xd1   :  { %1113 = vmatpush3.bf16.msra.mxu0 %v1231_v60  ;;  %v964_v60 = vld [vmem:[%s1477_s2 + $0x5] ss:$0 sm:$0xff] }
  0xd2   :  { %1138 = vmatprep.subr.bf16.mxu0 %v1330_v1 }
 0x187   :  { %v175_v44 = vpop.f32.mrb[0].mxu0 }
 0x188   :  { %v176_v45 = vadd.f32 %v920_v43, %v175_v44  ;;  %v1076_v46 = vpop.f32.mrb[1].mxu0 }
 0x189   :  { %v178_v47 = vpop.f32.mrb[2].mxu0 }
 0x18a   :  { %v182_v48 = vmin.f32 %v176_v45, 0.0  ;;  %v1077_v49 = vpop.f32.mrb[3].mxu0  ;;  %vm181_vm2 = vcmp.gt.f32.partialorder %v176_v45, 0.0 }
 0x18c   :  { %v183_v50 = vmul.f32 1.442695, %v182_v48 }
 0x18e   :  { %1266 = vpow2.f32 %v183_v50 }
 0x198   :  { %v1267_v51 = vpop.eup %1266 }
 0x199   :  { %v929_v52 = vadd.f32 -1.0, %v1267_v51 }
 0x19b   :  { %v186_v53 = vsel %vm181_vm2, %v176_v45, %v929_v52  ;;  %v1250_v52 = vld [vmem:[#allocation2 + $0x190] sm:$0xff]  }
 0x19c   :  { %v187_v54 = vpack.c.bf16 %v186_v53, %v186_v53  ;;  %v1251_v53 = vld [vmem:[#allocation2 + $0x198] sm:$0xff]  }
 0x19e   :  { %1095 = vmatmul.mubr.bf16.vlgmr.msra.gmra.mrb[0].mxu1 %v187_v54  ;;  %v1252_v54 = vld [vmem:[#allocation2 + $0x1a0] sm:$0xff]  }
 0x19f   :  { %1134 = vmatprep.mubr.msk.bf16.mxu1 %vm1332_vm0, %v1330_v1  ;;  %1119 = vmatpush3.bf16.msra.mxu1 %v1232_v61 }
 0x1a0   :  { %1120 = vmatprep.subr.bf16.mxu1 %v1330_v1 }
 0x1a3   :  { %1121 = vmatpush3.bf16.msra.mxu1 %v1233_v62 }
 0x1a4   :  { %1122 = vmatprep.subr.bf16.mxu1 %v1330_v1 }
 0x1a7   :  { %1123 = vmatpush3.bf16.msra.mxu1 %v1234_v12  ;;  %v1261_v12 = vld [vmem:[#allocation2 + $0x1e8] sm:$0xff]  }
 0x1a8   :  { %1124 = vmatprep.subr.bf16.mxu1 %v1330_v1 }
 0x1ab   :  { %1125 = vmatpush3.bf16.msra.mxu1 %v1235_v13  ;;  %v1262_v13 = vld [vmem:[#allocation2 + $0x1f0] sm:$0xff]  }
 0x1ac   :  { %1126 = vmatprep.subr.bf16.mxu1 %v1330_v1 }
 0x1af   :  { %1127 = vmatpush3.bf16.msra.mxu1 %v1236_v14  ;;  %v1263_v14 = vld [vmem:[#allocation2 + $0x1f8] sm:$0xff]  }
 0x1b0   :  { %1128 = vmatprep.subr.bf16.mxu1 %v1330_v1 }
 0x1b3   :  { %1129 = vmatpush3.bf16.msra.mxu1 %v1237_v15  ;;  %v975_v15 = vld [vmem:[%s1477_s2 + $0x6] ss:$0 sm:$0xff] }
 0x1b4   :  { %1130 = vmatprep.subr.bf16.mxu1 %v1330_v1 }
 0x1b7   :  { %1131 = vmatpush3.bf16.msra.mxu1 %v1238_v16 }
 0x1b8   :  { %1132 = vmatprep.subr.bf16.mxu1 %v1330_v1 }
 0x1bb   :  { %1133 = vmatpush3.bf16.msra.mxu1 %v1239_v17 }
 0x1bc   :  { %1158 = vmatprep.subr.bf16.mxu1 %v1330_v1 }
 0x271   :  { %v295_v0 = vpop.f32.mrb[0].mxu1 }
 0x272   :  { %v296_v2 = vadd.f32 %v931_v63, %v295_v0  ;;  %v1096_v3 = vpop.f32.mrb[1].mxu1 }
 0x273   :  { %v298_v4 = vpop.f32.mrb[2].mxu1 }
 0x274   :  { %v302_v5 = vmin.f32 %v296_v2, 0.0  ;;  %v1097_v6 = vpop.f32.mrb[3].mxu1  ;;  %vm301_vm3 = vcmp.gt.f32.partialorder %v296_v2, 0.0 }
 0x276   :  { %v303_v7 = vmul.f32 1.442695, %v302_v5 }
 0x278   :  { %1268 = vpow2.f32 %v303_v7 }
 0x282   :  { %v1269_v8 = vpop.eup %1268 }
 0x283   :  { %v940_v9 = vadd.f32 -1.0, %v1269_v8 }
 0x285   :  { %v306_v10 = vsel %vm301_vm3, %v296_v2, %v940_v9  ;;  %v1258_v9 = vld [vmem:[#allocation2 + $0x1d0] sm:$0xff]  }
 0x286   :  { %v307_v11 = vpack.c.bf16 %v306_v10, %v306_v10  ;;  %v1259_v10 = vld [vmem:[#allocation2 + $0x1d8] sm:$0xff]  }
 0x288   :  { %1115 = vmatmul.mubr.bf16.vlgmr.msra.gmra.mrb[4].mxu0 %v307_v11  ;;  %v1260_v11 = vld [vmem:[#allocation2 + $0x1e0] sm:$0xff]  }
 0x289   :  { %1154 = vmatprep.mubr.msk.bf16.mxu0 %vm1332_vm0, %v1330_v1  ;;  %1139 = vmatpush3.bf16.msra.mxu0 %v1240_v18 }
 0x28a   :  { %1140 = vmatprep.subr.bf16.mxu0 %v1330_v1 }
 0x28d   :  { %1141 = vmatpush3.bf16.msra.mxu0 %v1241_v19 }
 0x28e   :  { %1142 = vmatprep.subr.bf16.mxu0 %v1330_v1 }
 0x291   :  { %1143 = vmatpush3.bf16.msra.mxu0 %v1242_v32 }
 0x292   :  { %1144 = vmatprep.subr.bf16.mxu0 %v1330_v1 }
 0x295   :  { %1145 = vmatpush3.bf16.msra.mxu0 %v1243_v33 }
 0x296   :  { %1146 = vmatprep.subr.bf16.mxu0 %v1330_v1 }
 0x299   :  { %1147 = vmatpush3.bf16.msra.mxu0 %v1244_v34 }
 0x29a   :  { %1148 = vmatprep.subr.bf16.mxu0 %v1330_v1 }
 0x29d   :  { %1149 = vmatpush3.bf16.msra.mxu0 %v1245_v35 }
 0x29e   :  { %1150 = vmatprep.subr.bf16.mxu0 %v1330_v1 }
 0x2a1   :  { %1151 = vmatpush3.bf16.msra.mxu0 %v1246_v36 }
 0x2a2   :  { %1152 = vmatprep.subr.bf16.mxu0 %v1330_v1 }
 0x2a5   :  { %1153 = vmatpush3.bf16.msra.mxu0 %v1247_v37 }
 0x2a6   :  { %1178 = vmatprep.subr.bf16.mxu0 %v1330_v1 }
 0x35b   :  { %v415_v21 = vpop.f32.mrb[4].mxu0 }
 0x35c   :  { %v416_v22 = vadd.f32 %v942_v20, %v415_v21  ;;  %v1116_v23 = vpop.f32.mrb[5].mxu0 }
 0x35d   :  { %v418_v24 = vpop.f32.mrb[6].mxu0 }
 0x35e   :  { %v422_v25 = vmin.f32 %v416_v22, 0.0  ;;  %v1117_v26 = vpop.f32.mrb[7].mxu0  ;;  %vm421_vm4 = vcmp.gt.f32.partialorder %v416_v22, 0.0 }
 0x360   :  { %v423_v27 = vmul.f32 1.442695, %v422_v25 }
 0x362   :  { %1270 = vpow2.f32 %v423_v27 }
 0x36c   :  { %v1271_v28 = vpop.eup %1270 }
 0x36d   :  { %v951_v29 = vadd.f32 -1.0, %v1271_v28 }
 0x36f   :  { %v426_v30 = vsel %vm421_vm4, %v416_v22, %v951_v29 }
 0x370   :  { %v427_v31 = vpack.c.bf16 %v426_v30, %v426_v30 }
 0x372   :  { %1135 = vmatmul.mubr.bf16.vlgmr.msra.gmra.mrb[4].mxu1 %v427_v31 }
 0x373   :  { %1174 = vmatprep.mubr.msk.bf16.mxu1 %vm1332_vm0, %v1330_v1  ;;  %1159 = vmatpush3.bf16.msra.mxu1 %v1248_v38 }
 0x374   :  { %1160 = vmatprep.subr.bf16.mxu1 %v1330_v1 }
 0x377   :  { %1161 = vmatpush3.bf16.msra.mxu1 %v1249_v39 }
 0x378   :  { %1162 = vmatprep.subr.bf16.mxu1 %v1330_v1 }
 0x37b   :  { %1163 = vmatpush3.bf16.msra.mxu1 %v1250_v52 }
 0x37c   :  { %1164 = vmatprep.subr.bf16.mxu1 %v1330_v1 }
 0x37f   :  { %1165 = vmatpush3.bf16.msra.mxu1 %v1251_v53 }
 0x380   :  { %1166 = vmatprep.subr.bf16.mxu1 %v1330_v1 }
 0x383   :  { %1167 = vmatpush3.bf16.msra.mxu1 %v1252_v54 }
 0x384   :  { %1168 = vmatprep.subr.bf16.mxu1 %v1330_v1 }
 0x387   :  { %1169 = vmatpush3.bf16.msra.mxu1 %v1253_v55 }
 0x388   :  { %1170 = vmatprep.subr.bf16.mxu1 %v1330_v1 }
 0x38b   :  { %1171 = vmatpush3.bf16.msra.mxu1 %v1254_v56 }
 0x38c   :  { %1172 = vmatprep.subr.bf16.mxu1 %v1330_v1 }
 0x38f   :  { %1173 = vmatpush3.bf16.msra.mxu1 %v1255_v57 }
 0x445   :  { %v535_v41 = vpop.f32.mrb[4].mxu1 }
 0x446   :  { %v536_v42 = vadd.f32 %v953_v40, %v535_v41  ;;  %v1136_v43 = vpop.f32.mrb[5].mxu1 }
 0x447   :  { %v538_v44 = vpop.f32.mrb[6].mxu1 }
 0x448   :  { %v542_v45 = vmin.f32 %v536_v42, 0.0  ;;  %v1137_v46 = vpop.f32.mrb[7].mxu1  ;;  %vm541_vm5 = vcmp.gt.f32.partialorder %v536_v42, 0.0 }
 0x44a   :  { %v543_v47 = vmul.f32 1.442695, %v542_v45 }
 0x44c   :  { %1272 = vpow2.f32 %v543_v47 }
 0x456   :  { %v1273_v48 = vpop.eup %1272 }
 0x457   :  { %v962_v49 = vadd.f32 -1.0, %v1273_v48 }
 0x459   :  { %v546_v50 = vsel %vm541_vm5, %v536_v42, %v962_v49 }
 0x45a   :  { %v547_v51 = vpack.c.bf16 %v546_v50, %v546_v50 }
 0x45c   :  { %1155 = vmatmul.mubr.bf16.vlgmr.msra.gmra.mrb[8].mxu0 %v547_v51 }
 0x45d   :  { %1194 = vmatprep.mubr.msk.bf16.mxu0 %vm1332_vm0, %v1330_v1  ;;  %1179 = vmatpush3.bf16.msra.mxu0 %v1256_v58 }
 0x45e   :  { %1180 = vmatprep.subr.bf16.mxu0 %v1330_v1 }
 0x461   :  { %1181 = vmatpush3.bf16.msra.mxu0 %v1257_v59 }
 0x462   :  { %1182 = vmatprep.subr.bf16.mxu0 %v1330_v1 }
 0x465   :  { %1183 = vmatpush3.bf16.msra.mxu0 %v1258_v9 }
 0x466   :  { %1184 = vmatprep.subr.bf16.mxu0 %v1330_v1 }
 0x469   :  { %1185 = vmatpush3.bf16.msra.mxu0 %v1259_v10 }
 0x46a   :  { %1186 = vmatprep.subr.bf16.mxu0 %v1330_v1 }
 0x46d   :  { %1187 = vmatpush3.bf16.msra.mxu0 %v1260_v11 }
 0x46e   :  { %1188 = vmatprep.subr.bf16.mxu0 %v1330_v1 }
 0x471   :  { %1189 = vmatpush3.bf16.msra.mxu0 %v1261_v12 }
 0x472   :  { %1190 = vmatprep.subr.bf16.mxu0 %v1330_v1 }
 0x475   :  { %1191 = vmatpush3.bf16.msra.mxu0 %v1262_v13 }
 0x476   :  { %1192 = vmatprep.subr.bf16.mxu0 %v1330_v1  ;;  %v986_v1 = vld [vmem:[%s1477_s2 + $0x7] ss:$0 sm:$0xff] }
 0x479   :  { %1193 = vmatpush3.bf16.msra.mxu0 %v1263_v14 }
 0x52f   :  { %v655_v61 = vpop.f32.mrb[8].mxu0 }
 0x530   :  { %v656_v62 = vadd.f32 %v964_v60, %v655_v61  ;;  %v1156_v63 = vpop.f32.mrb[9].mxu0 }
 0x531   :  { %v658_v0 = vpop.f32.mrb[10].mxu0 }
 0x532   :  { %v662_v2 = vmin.f32 %v656_v62, 0.0  ;;  %v1157_v3 = vpop.f32.mrb[11].mxu0  ;;  %vm661_vm6 = vcmp.gt.f32.partialorder %v656_v62, 0.0 }
 0x534   :  { %v663_v4 = vmul.f32 1.442695, %v662_v2 }
 0x536   :  { %1274 = vpow2.f32 %v663_v4 }
 0x540   :  { %v1275_v5 = vpop.eup %1274 }
 0x541   :  { %v973_v6 = vadd.f32 -1.0, %v1275_v5 }
 0x543   :  { %v666_v7 = vsel %vm661_vm6, %v656_v62, %v973_v6 }
 0x544   :  { %v667_v8 = vpack.c.bf16 %v666_v7, %v666_v7 }
 0x546   :  { %1175 = vmatmul.mubr.bf16.vlgmr.msra.gmra.mrb[8].mxu1 %v667_v8 }
 0x619   :  { %v775_v16 = vpop.f32.mrb[8].mxu1 }
 0x61a   :  { %v776_v17 = vadd.f32 %v975_v15, %v775_v16  ;;  %v1176_v18 = vpop.f32.mrb[9].mxu1 }
 0x61b   :  { %v778_v19 = vpop.f32.mrb[10].mxu1 }
 0x61c   :  { %v782_v20 = vmin.f32 %v776_v17, 0.0  ;;  %v1177_v21 = vpop.f32.mrb[11].mxu1  ;;  %vm781_vm7 = vcmp.gt.f32.partialorder %v776_v17, 0.0 }
 0x61e   :  { %v783_v22 = vmul.f32 1.442695, %v782_v20 }
 0x620   :  { %1276 = vpow2.f32 %v783_v22 }
 0x62a   :  { %v1277_v23 = vpop.eup %1276 }
 0x62b   :  { %v984_v24 = vadd.f32 -1.0, %v1277_v23 }
 0x62d   :  { %v786_v25 = vsel %vm781_vm7, %v776_v17, %v984_v24 }
 0x62e   :  { %v787_v26 = vpack.c.bf16 %v786_v25, %v786_v25 }
 0x630   :  { %1195 = vmatmul.mubr.bf16.vlgmr.msra.gmra.mrb[12].mxu0 %v787_v26 }
 0x703   :  { %v895_v27 = vpop.f32.mrb[12].mxu0 }
 0x704   :  { %v896_v28 = vadd.f32 %v986_v1, %v895_v27  ;;  %v1196_v29 = vpop.f32.mrb[13].mxu0 }
 0x705   :  { %v898_v30 = vpop.f32.mrb[14].mxu0 }
 0x706   :  { %901 = vst [vmem:[#allocation5] sm:$0xff] %v896_v28  ;;  %v1197_v31 = vpop.f32.mrb[15].mxu0 }
 0x707   :  { %1311 = shalt.err (!%p1308_p12)
}
 0x708   :  { %s1312_s2 = scalar_lea.hbm %s1478_s3, 128 }
 0x709   :  { %p1313_p13 = scmp.ne.s32.totalorder %s1478_s3, %s1312_s2  ;;  %p1316_p0 = scmp.lt.u32.totalorder %s1312_s2, %s1478_s3 }
 0x70b   :  { %p1318_p1 = pnand %p1316_p0, %p1313_p13 }
 0x70d   :  { %1321 = shalt.err (!%p1318_p1)
}
 0x70e   :  { %911 = dma.vmem_to_hbm [thread:$0]  %s909_s16, 128, %s1478_s3, [#allocation4]  }
 0x70f   :  { %1324 = dma.done.wait [#allocation4], 128  }
 0x710   :  { %1325 = vsyncadd [#allocation4], 4294967168 }
 0x711   :  { %915 = vsyncpa [#allocation3], 1 }
 0x712   :  { %916 = vsyncpa [#allocation4], 1 }

</bundles_post_ra>
